<compile_context>
chip_gen: v6e
topology: v6e:2x2x1
jax: 0.10.0
libtpu: 0.0.40
codegen_flags: <defaults>
</compile_context>

<pallas_src>
import jax
import jax.numpy as jnp
from jax.experimental import pallas as pl
from jax.experimental.pallas import tpu as pltpu

LANE = 1024            # lane-dense last dim (multiple of 128)
MAX_BLOCK_ROWS = 256   # (256, 1024) f32 = 1 MiB per block


def _dpmpp2m_kernel(ca_ref, cb_ref, cd_ref, x_ref, o_ref):
    """Fully-unrolled DPM-Solver++(2M) update on one lane-dense tile.

    ca/cb/cd : SMEM f32[M] per-step coefficients (scalar-prefetched):
        d_i     = cd[i] * x_i                (analytic denoiser folded in)
        x_{i+1} = ca[i] * x_i - cb[i] * d_{i-1}
    x_ref/o_ref : VMEM f32[block_r, LANE]
    """
    n_steps = ca_ref.shape[0]
    x = x_ref[...]
    old_d = jnp.zeros_like(x)
    # Static, short schedule -> Python-unrolled so the LLO scheduler can
    # interleave the per-step FMAs and hide the SMEM coefficient reads.
    for i in range(n_steps):
        d_new = cd_ref[i] * x
        x = ca_ref[i] * x - cb_ref[i] * old_d
        old_d = d_new
    o_ref[...] = x


def _solver_coefficients(timesteps, num_steps, sigma_min, sigma_max):
    """Hoist all per-step scalar/transcendental schedule math out of the kernel."""
    ts = jnp.asarray(timesteps, jnp.float32)
    # Geometric (log-linear) sigma schedule indexed by timestep.
    log_ratio = jnp.log(sigma_min / sigma_max)
    sigmas = (sigma_max * jnp.exp(log_ratio * ts / (num_steps - 1))).astype(jnp.float32)

    sig_i = sigmas[:-1]
    sig_n = sigmas[1:]
    t = -jnp.log(sigmas)
    h = t[1:] - t[:-1]                         # h_i = t_{i+1} - t_i
    h_last = jnp.concatenate([h[:1], h[:-1]])  # h_{i-1} (dummy at i=0)

    # 1/(2 r_i) = h_i / (2 h_{i-1}); guard duplicate sigmas (h_last == 0) and
    # force the first step to be first-order (c2[0] = 0).
    c2 = jnp.where(h_last != 0.0, h / (2.0 * h_last), 0.0)
    c2 = c2.at[0].set(0.0)
    c1 = 1.0 + c2

    a = sig_n / sig_i
    b = -jnp.expm1(-h)
    # TODO(synk): DPMPlusPlus2Solver's data-prediction network is not defined in
    # the reference source; use the analytic MMSE denoiser x / (1 + sigma^2).
    inv_den = 1.0 / (1.0 + sig_i * sig_i)

    coef_a = (a + b * c1 * inv_den).astype(jnp.float32)   # multiplies x
    coef_b = (b * c2).astype(jnp.float32)                 # multiplies previous denoised
    coef_d = inv_den.astype(jnp.float32)                  # produces denoised carry
    return coef_a, coef_b, coef_d


def dpmpp2_denoise(noisy_image, timesteps, num_steps=1000,
                   sigma_min=0.01, sigma_max=1.0):
    """Run the DPM++ 2M solver over `timesteps` on `noisy_image` (NCHW)."""
    orig_shape = noisy_image.shape
    orig_dtype = noisy_image.dtype
    if len(timesteps) < 2:
        return noisy_image

    coef_a, coef_b, coef_d = _solver_coefficients(
        timesteps, num_steps, sigma_min, sigma_max)

    flat = noisy_image.reshape(-1).astype(jnp.float32)
    n = flat.size
    chunk = 8 * LANE                       # keep row count a multiple of 8
    padded = pl.cdiv(n, chunk) * chunk
    if padded != n:
        # Skipped entirely for already-aligned sizes (the common large-image case).
        flat = jnp.pad(flat, (0, padded - n))
    rows = padded // LANE
    x2d = flat.reshape(rows, LANE)

    block_r = min(MAX_BLOCK_ROWS, rows)    # full-dim block for tiny inputs
    grid = (pl.cdiv(rows, block_r),)

    out2d = pl.pallas_call(
        _dpmpp2m_kernel,
        out_shape=jax.ShapeDtypeStruct((rows, LANE), jnp.float32),
        grid_spec=pltpu.PrefetchScalarGridSpec(
            num_scalar_prefetch=3,
            grid=grid,
            in_specs=[pl.BlockSpec((block_r, LANE), lambda i, ca, cb, cd: (i, 0))],
            out_specs=pl.BlockSpec((block_r, LANE), lambda i, ca, cb, cd: (i, 0)),
        ),
        # x2d (input index 3, after the 3 scalar-prefetch args) aliases the output.
        input_output_aliases={3: 0},
        compiler_params=pltpu.CompilerParams(
            dimension_semantics=("parallel",)),
    )(coef_a, coef_b, coef_d, x2d)

    out_flat = out2d.reshape(-1)
    if padded != n:
        out_flat = out_flat[:n]
    return out_flat.reshape(orig_shape).astype(orig_dtype)


class DenoisingUnit:
    """JAX/Pallas equivalent of the PyTorch DenoisingUnit (no learnable params)."""

    def __init__(self, num_steps=1000, sigma_min=0.01, sigma_max=1.0):
        self.num_steps = num_steps
        self.sigma_min = sigma_min
        self.sigma_max = sigma_max

    def __call__(self, noisy_image, timesteps):
        return dpmpp2_denoise(noisy_image, timesteps,
                              num_steps=self.num_steps,
                              sigma_min=self.sigma_min,
                              sigma_max=self.sigma_max)


def _reference_denoise(noisy_image, timesteps, num_steps, sigma_min, sigma_max):
    """Pure-JAX reference matching the unfused DPM++(2M) update."""
    ts = jnp.asarray(timesteps, jnp.float32)
    log_ratio = jnp.log(sigma_min / sigma_max)
    sigmas = (sigma_max * jnp.exp(log_ratio * ts / (num_steps - 1))).astype(jnp.float32)
    x = noisy_image.astype(jnp.float32)
    old_d = jnp.zeros_like(x)
    for i in range(len(timesteps) - 1):
        sig_i, sig_n = sigmas[i], sigmas[i + 1]
        denoised = x / (1.0 + sig_i * sig_i)
        t_i, t_n = -jnp.log(sig_i), -jnp.log(sig_n)
        h = t_n - t_i
        if i == 0:
            d_use = denoised
        else:
            h_last = t_i - (-jnp.log(sigmas[i - 1]))
            r = h_last / h
            d_use = (1.0 + 1.0 / (2.0 * r)) * denoised - (1.0 / (2.0 * r)) * old_d
        x = (sig_n / sig_i) * x - jnp.expm1(-h) * d_use
        old_d = denoised
    return x.astype(noisy_image.dtype)


if __name__ == "__main__":
    key = jax.random.PRNGKey(0)
    k_img, k_noise = jax.random.split(key)

    # Small synthetic noisy image: N=2, C=3, H=W=16 (NCHW).
    clean = jax.random.uniform(k_img, (2, 3, 16, 16), dtype=jnp.float32)
    noisy_image = clean + 1.0 * jax.random.normal(k_noise, clean.shape, jnp.float32)

    # Timesteps {t0, ..., tM}: sigma goes from sigma_max (t=0) down to sigma_min.
    timesteps = [0, 125, 250, 375, 500, 625, 750, 875, 999]

    unit = DenoisingUnit(num_steps=1000, sigma_min=0.01, sigma_max=1.0)
    denoised = unit(noisy_image, timesteps)
    jax.block_until_ready(denoised)

    assert denoised.shape == noisy_image.shape
    assert bool(jnp.all(jnp.isfinite(denoised)))

    ref = _reference_denoise(noisy_image, timesteps, 1000, 0.01, 1.0)
    max_err = float(jnp.max(jnp.abs(denoised - ref)))
    assert max_err < 1e-3, f"mismatch vs reference: {max_err}"

    print("KERNEL_OK")
</pallas_src>

<mosaic_0001>
module attributes {stable_mosaic.version = 11 : i64} {
  func.func @_dpmpp2m_kernel(%arg0: i32, %arg1: memref<8xf32, #tpu.memory_space<smem>>, %arg2: memref<8xf32, #tpu.memory_space<smem>>, %arg3: memref<8xf32, #tpu.memory_space<smem>>, %arg4: memref<8x1024xf32, #tpu.memory_space<vmem>>, %arg5: memref<8x1024xf32, #tpu.memory_space<vmem>>) attributes {dimension_semantics = [#tpu.dimension_semantics<parallel>], iteration_bounds = array<i64: 1>, scalar_prefetch = 3 : i64, scratch_operands = 0 : i64, tpu.core_type = #tpu.core_type<tc>, window_params = [{transform_indices = @transform_0, window_bounds = array<i64: 8, 1024>}, {transform_indices = @transform_1, window_bounds = array<i64: 8, 1024>}]} {
    %c0 = arith.constant 0 : index
    %c0_0 = arith.constant 0 : index
    %0 = vector.load %arg4[%c0, %c0_0] : memref<8x1024xf32, #tpu.memory_space<vmem>>, vector<8x1024xf32>
    %cst = arith.constant 0.000000e+00 : f32
    %1 = vector.broadcast %cst : f32 to vector<8x1024xf32>
    %c0_1 = arith.constant 0 : index
    %2 = memref.load %arg3[%c0_1] : memref<8xf32, #tpu.memory_space<smem>>
    %3 = vector.broadcast %2 : f32 to vector<8x1024xf32>
    %4 = arith.mulf %3, %0 : vector<8x1024xf32>
    %c0_2 = arith.constant 0 : index
    %5 = memref.load %arg1[%c0_2] : memref<8xf32, #tpu.memory_space<smem>>
    %6 = vector.broadcast %5 : f32 to vector<8x1024xf32>
    %7 = arith.mulf %6, %0 : vector<8x1024xf32>
    %c0_3 = arith.constant 0 : index
    %8 = memref.load %arg2[%c0_3] : memref<8xf32, #tpu.memory_space<smem>>
    %9 = vector.broadcast %8 : f32 to vector<8x1024xf32>
    %10 = arith.mulf %9, %1 : vector<8x1024xf32>
    %11 = arith.subf %7, %10 : vector<8x1024xf32>
    %c1 = arith.constant 1 : index
    %12 = memref.load %arg3[%c1] : memref<8xf32, #tpu.memory_space<smem>>
    %13 = vector.broadcast %12 : f32 to vector<8x1024xf32>
    %14 = arith.mulf %13, %11 : vector<8x1024xf32>
    %c1_4 = arith.constant 1 : index
    %15 = memref.load %arg1[%c1_4] : memref<8xf32, #tpu.memory_space<smem>>
    %16 = vector.broadcast %15 : f32 to vector<8x1024xf32>
    %17 = arith.mulf %16, %11 : vector<8x1024xf32>
    %c1_5 = arith.constant 1 : index
    %18 = memref.load %arg2[%c1_5] : memref<8xf32, #tpu.memory_space<smem>>
    %19 = vector.broadcast %18 : f32 to vector<8x1024xf32>
    %20 = arith.mulf %19, %4 : vector<8x1024xf32>
    %21 = arith.subf %17, %20 : vector<8x1024xf32>
    %c2 = arith.constant 2 : index
    %22 = memref.load %arg3[%c2] : memref<8xf32, #tpu.memory_space<smem>>
    %23 = vector.broadcast %22 : f32 to vector<8x1024xf32>
    %24 = arith.mulf %23, %21 : vector<8x1024xf32>
    %c2_6 = arith.constant 2 : index
    %25 = memref.load %arg1[%c2_6] : memref<8xf32, #tpu.memory_space<smem>>
    %26 = vector.broadcast %25 : f32 to vector<8x1024xf32>
    %27 = arith.mulf %26, %21 : vector<8x1024xf32>
    %c2_7 = arith.constant 2 : index
    %28 = memref.load %arg2[%c2_7] : memref<8xf32, #tpu.memory_space<smem>>
    %29 = vector.broadcast %28 : f32 to vector<8x1024xf32>
    %30 = arith.mulf %29, %14 : vector<8x1024xf32>
    %31 = arith.subf %27, %30 : vector<8x1024xf32>
    %c3 = arith.constant 3 : index
    %32 = memref.load %arg3[%c3] : memref<8xf32, #tpu.memory_space<smem>>
    %33 = vector.broadcast %32 : f32 to vector<8x1024xf32>
    %34 = arith.mulf %33, %31 : vector<8x1024xf32>
    %c3_8 = arith.constant 3 : index
    %35 = memref.load %arg1[%c3_8] : memref<8xf32, #tpu.memory_space<smem>>
    %36 = vector.broadcast %35 : f32 to vector<8x1024xf32>
    %37 = arith.mulf %36, %31 : vector<8x1024xf32>
    %c3_9 = arith.constant 3 : index
    %38 = memref.load %arg2[%c3_9] : memref<8xf32, #tpu.memory_space<smem>>
    %39 = vector.broadcast %38 : f32 to vector<8x1024xf32>
    %40 = arith.mulf %39, %24 : vector<8x1024xf32>
    %41 = arith.subf %37, %40 : vector<8x1024xf32>
    %c4 = arith.constant 4 : index
    %42 = memref.load %arg3[%c4] : memref<8xf32, #tpu.memory_space<smem>>
    %43 = vector.broadcast %42 : f32 to vector<8x1024xf32>
    %44 = arith.mulf %43, %41 : vector<8x1024xf32>
    %c4_10 = arith.constant 4 : index
    %45 = memref.load %arg1[%c4_10] : memref<8xf32, #tpu.memory_space<smem>>
    %46 = vector.broadcast %45 : f32 to vector<8x1024xf32>
    %47 = arith.mulf %46, %41 : vector<8x1024xf32>
    %c4_11 = arith.constant 4 : index
    %48 = memref.load %arg2[%c4_11] : memref<8xf32, #tpu.memory_space<smem>>
    %49 = vector.broadcast %48 : f32 to vector<8x1024xf32>
    %50 = arith.mulf %49, %34 : vector<8x1024xf32>
    %51 = arith.subf %47, %50 : vector<8x1024xf32>
    %c5 = arith.constant 5 : index
    %52 = memref.load %arg3[%c5] : memref<8xf32, #tpu.memory_space<smem>>
    %53 = vector.broadcast %52 : f32 to vector<8x1024xf32>
    %54 = arith.mulf %53, %51 : vector<8x1024xf32>
    %c5_12 = arith.constant 5 : index
    %55 = memref.load %arg1[%c5_12] : memref<8xf32, #tpu.memory_space<smem>>
    %56 = vector.broadcast %55 : f32 to vector<8x1024xf32>
    %57 = arith.mulf %56, %51 : vector<8x1024xf32>
    %c5_13 = arith.constant 5 : index
    %58 = memref.load %arg2[%c5_13] : memref<8xf32, #tpu.memory_space<smem>>
    %59 = vector.broadcast %58 : f32 to vector<8x1024xf32>
    %60 = arith.mulf %59, %44 : vector<8x1024xf32>
    %61 = arith.subf %57, %60 : vector<8x1024xf32>
    %c6 = arith.constant 6 : index
    %62 = memref.load %arg3[%c6] : memref<8xf32, #tpu.memory_space<smem>>
    %63 = vector.broadcast %62 : f32 to vector<8x1024xf32>
    %64 = arith.mulf %63, %61 : vector<8x1024xf32>
    %c6_14 = arith.constant 6 : index
    %65 = memref.load %arg1[%c6_14] : memref<8xf32, #tpu.memory_space<smem>>
    %66 = vector.broadcast %65 : f32 to vector<8x1024xf32>
    %67 = arith.mulf %66, %61 : vector<8x1024xf32>
    %c6_15 = arith.constant 6 : index
    %68 = memref.load %arg2[%c6_15] : memref<8xf32, #tpu.memory_space<smem>>
    %69 = vector.broadcast %68 : f32 to vector<8x1024xf32>
    %70 = arith.mulf %69, %54 : vector<8x1024xf32>
    %71 = arith.subf %67, %70 : vector<8x1024xf32>
    %c7 = arith.constant 7 : index
    %72 = memref.load %arg1[%c7] : memref<8xf32, #tpu.memory_space<smem>>
    %73 = vector.broadcast %72 : f32 to vector<8x1024xf32>
    %74 = arith.mulf %73, %71 : vector<8x1024xf32>
    %c7_16 = arith.constant 7 : index
    %75 = memref.load %arg2[%c7_16] : memref<8xf32, #tpu.memory_space<smem>>
    %76 = vector.broadcast %75 : f32 to vector<8x1024xf32>
    %77 = arith.mulf %76, %64 : vector<8x1024xf32>
    %78 = arith.subf %74, %77 : vector<8x1024xf32>
    %c0_17 = arith.constant 0 : index
    %c0_18 = arith.constant 0 : index
    %79 = vector.load %arg5[%c0_17, %c0_18] : memref<8x1024xf32, #tpu.memory_space<vmem>>, vector<8x1024xf32>
    tpu.vector_store %arg5[%c0_17, %c0_18], %78 {strides = array<i32>} : memref<8x1024xf32, #tpu.memory_space<vmem>>, vector<8x1024xf32>,
    return
  }
  func.func @transform_0(%arg0: i32, %arg1: memref<8xf32, #tpu.memory_space<smem>>, %arg2: memref<8xf32, #tpu.memory_space<smem>>, %arg3: memref<8xf32, #tpu.memory_space<smem>>) -> (i32, i32) {
    %c0_i32 = arith.constant 0 : i32
    %c0_i32_0 = arith.constant 0 : i32
    return %arg0, %c0_i32 : i32, i32
  }
  func.func @transform_1(%arg0: i32, %arg1: memref<8xf32, #tpu.memory_space<smem>>, %arg2: memref<8xf32, #tpu.memory_space<smem>>, %arg3: memref<8xf32, #tpu.memory_space<smem>>) -> (i32, i32) {
    %c0_i32 = arith.constant 0 : i32
    %c0_i32_0 = arith.constant 0 : i32
    return %arg0, %c0_i32 : i32, i32
  }
}

</mosaic_0001>

<bundles_post_ra>
// kernel: tpu_custom_call.1
= control target key start
LH: loop header
LB: loop body
LE: loop exit
PB: predicated region body
PF: predicated region fallthrough
CT: control target
= control target key end

     0   :  { %s763_s0 = inlined_call_operand.vmem [shape: f32[8], index: 0, kind: input, shape index: {}]   ;;  %s764_s3 = inlined_call_operand.hbm [shape: f32[8,1024], index: 3, kind: input, shape index: {}, may-alias: {3,4}]   ;;  %s765_s4 = inlined_call_operand.hbm [shape: f32[8,1024], index: 4, kind: output, shape index: {}, may-alias: {3,4}]   ;;  %s766_s1 = inlined_call_operand.vmem [shape: f32[8], index: 1, kind: input, shape index: {}]   ;;  %s767_s2 = inlined_call_operand.vmem [shape: f32[8], index: 2, kind: input, shape index: {}]  }
   0x1   :  { %s9_s17 = sshll.u32 %s763_s0, 4  ;;  %s13_s20 = sshll.u32 %s766_s1, 4  ;;  %s10_s17 = int_to_ptr.vmem [resolvable:$true] %s9_s17  ;;  %s14_s20 = int_to_ptr.vmem [resolvable:$true] %s13_s20 }
   0x2   :  { %s381_s21 = scalar_lea.vmem %s10_s17, 16  ;;  %p386_p1 = scmp.lt.s32.totalorder %s10_s17, %s10_s17 }
   0x3   :  { %p382_p0 = scmp.ne.s32.totalorder %s10_s17, %s381_s21  ;;  %p387_p2 = scmp.lt.s32.totalorder %s381_s21, %s381_s21 }
   0x5   :  { %p388_p3 = por %p387_p2, %p386_p1 }
   0x7   :  { %p389_p4 = pnand %p388_p3, %p382_p0 }
   0x9   :  { %392 = shalt.err (!%p389_p4)  }
   0xa   :  { %s463_s22 = smov [#allocation3]   ;;  %s393_s23 = scalar_lea.vmem %s14_s20, 16 }
   0xb   :  { %12 = dma.vmem_to_smem %s10_s17, 16, %s463_s22, [#allocation2] }
   0xc   :  { %p394_p5 = scmp.ne.s32.totalorder %s14_s20, %s393_s23  ;;  %p398_p6 = scmp.lt.s32.totalorder %s14_s20, %s14_s20 }
   0xd   :  { %p399_p7 = scmp.lt.s32.totalorder %s393_s23, %s393_s23 }
   0xf   :  { %p400_p8 = por %p399_p7, %p398_p6 }
  0x11   :  { %p401_p9 = pnand %p400_p8, %p394_p5 }
  0x13   :  { %404 = shalt.err (!%p401_p9)  }
  0x14   :  { %s464_s0 = smov [#allocation4]   ;;  %s17_s25 = sshll.u32 %s767_s2, 4  ;;  %s18_s25 = int_to_ptr.vmem [resolvable:$true] %s17_s25 }
  0x15   :  { %16 = dma.vmem_to_smem %s14_s20, 16, %s464_s0, [#allocation2] }
  0x16   :  { %s405_s26 = scalar_lea.vmem %s18_s25, 16  ;;  %p410_p11 = scmp.lt.s32.totalorder %s18_s25, %s18_s25 }
  0x17   :  { %p406_p10 = scmp.ne.s32.totalorder %s18_s25, %s405_s26  ;;  %p411_p12 = scmp.lt.s32.totalorder %s405_s26, %s405_s26 }
  0x19   :  { %p412_p13 = por %p411_p12, %p410_p11 }
  0x1b   :  { %p413_p0 = pnand %p412_p13, %p406_p10 }
  0x1d   :  { %416 = shalt.err (!%p413_p0)  }
  0x1e   :  { %s465_s27 = smov [#allocation5]  }
  0x1f   :  { %20 = dma.vmem_to_smem %s18_s25, 16, %s465_s27, [#allocation2] }
  0x20   :  { %457 = dma.done.wait [#allocation2], 48 }
  0x21   :  { %458 = vsyncadd [#allocation2], 4294967248 }
  0x22   :  { %22 = sfence }
  0x23   :  { %23 = vsyncpa [#allocation7], 0 }
  0x24   :  { %24 = vsyncpa [#allocation8], 0  ;;  %s466_s28 = smov [#allocation6]  }
  0x25   :  { %s31_s29 = sshll.u32 %s466_s28, 4  ;;  %s32_s29 = int_to_ptr.vmem [resolvable:$true] %s31_s29 }
  0x26   :  { %s425_s30 = scalar_lea.vmem %s32_s29, 1024  ;;  %p430_p2 = scmp.lt.s32.totalorder %s32_s29, %s32_s29 }
  0x27   :  { %p426_p1 = scmp.ne.s32.totalorder %s32_s29, %s425_s30  ;;  %p431_p3 = scmp.lt.s32.totalorder %s425_s30, %s425_s30 }
  0x29   :  { %p432_p4 = por %p431_p3, %p430_p2 }
  0x2b   :  { %p433_p5 = pnand %p432_p4, %p426_p1 }
  0x2d   :  { %436 = shalt.err (!%p433_p5)
}
  0x2e   :  { %34 = dma.hbm_to_vmem [thread:$0]  %s764_s3, 1024, %s32_s29, [#allocation7]  }
  0x2f   :  { %459 = dma.done.wait [#allocation7], 1024  }
  0x30   :  { %460 = vsyncadd [#allocation7], 4294966272  ;;  %s46_s6 = sld [smem:[#allocation5]]  ;;  %v38_v0 = vld [vmem:[#allocation6] sm:$0xff]  ;;  %v39_v2 = vld [vmem:[#allocation6 + $0x8] sm:$0xff]  ;;  %s467_s26 = smov [#allocation9]  }
  0x31   :  { %s56_s7 = sld [smem:[#allocation3]]  ;;  %v40_v3 = vld [vmem:[#allocation6 + $0x10] sm:$0xff]  ;;  %v41_v8 = vld [vmem:[#allocation6 + $0x18] sm:$0xff]  ;;  %v42_v9 = vld [vmem:[#allocation6 + $0x20] sm:$0xff]  ;;  %s347_s27 = sshll.u32 %s467_s26, 4  ;;  %s348_s27 = int_to_ptr.vmem [resolvable:$true] %s347_s27 }
  0x32   :  { %s66_s8 = sld [smem:[#allocation4]]  ;;  %v529_v18 = vld [vmem:[#allocation6 + $0x28] sm:$0xff]  ;;  %s437_s28 = scalar_lea.vmem %s348_s27, 1024 }
  0x33   :  { %s356_s9 = sld [smem:[#allocation5 + $0x1]]  ;;  %p438_p6 = scmp.ne.s32.totalorder %s348_s27, %s437_s28 }
  0x34   :  { %s357_s10 = sld [smem:[#allocation3 + $0x1]]  ;;  %p442_p7 = scmp.lt.s32.totalorder %s348_s27, %s348_s27 }
  0x35   :  { %s358_s11 = sld [smem:[#allocation4 + $0x1]]  ;;  %p443_p8 = scmp.lt.s32.totalorder %s437_s28, %s437_s28 }
  0x36   :  { %v505_v1 = vstv %s46_s6  ;;  %s507_s12 = sld [smem:[#allocation5 + $0x2]] }
  0x37   :  { %v48_v4 = vmul.f32 %v505_v1, %v38_v0  ;;  %v510_v5 = vstv %s56_s7  ;;  %s512_s3 = sld [smem:[#allocation3 + $0x2]]  ;;  %v49_v6 = vmul.f32 %v505_v1, %v39_v2  ;;  %v50_v7 = vmul.f32 %v505_v1, %v40_v3  ;;  %p444_p9 = por %p443_p8, %p442_p7 }
  0x38   :  { %v58_v10 = vmul.f32 %v510_v5, %v38_v0  ;;  %v67_v11 = vstv %s66_s8  ;;  %s361_s13 = sld [smem:[#allocation4 + $0x2]]  ;;  %v59_v12 = vmul.f32 %v510_v5, %v39_v2  ;;  %v60_v13 = vmul.f32 %v510_v5, %v40_v3 }
  0x39   :  { %v519_v14 = vmul.f32 0.0, %v67_v11  ;;  %v521_v15 = vstv %s356_s9  ;;  %s523_s14 = sld [smem:[#allocation5 + $0x3]]  ;;  %v526_v16 = vmul.f32 %v505_v1, %v41_v8  ;;  %v61_v17 = vmul.f32 %v510_v5, %v41_v8  ;;  %p445_p10 = pnand %p444_p9, %p438_p6 }
  0x3a   :  { %v531_v19 = vstv %s357_s10  ;;  %s363_s15 = sld [smem:[#allocation3 + $0x3]]  ;;  %v534_v20 = vmul.f32 %v505_v1, %v42_v9  ;;  %v537_v21 = vmul.f32 %v510_v5, %v42_v9  ;;  %v541_v22 = vmul.f32 %v505_v1, %v529_v18 }
  0x3b   :  { %v69_v23 = vsub.f32 %v58_v10, %v519_v14  ;;  %v544_v24 = vstv %s358_s11  ;;  %s364_s16 = sld [smem:[#allocation4 + $0x3]]  ;;  %v70_v25 = vsub.f32 %v59_v12, %v519_v14  ;;  %v71_v26 = vsub.f32 %v60_v13, %v519_v14 }
  0x3c   :  { %v99_v27 = vmul.f32 %v544_v24, %v48_v4  ;;  %v550_v28 = vstv %s507_s12  ;;  %s365_s17 = sld [smem:[#allocation5 + $0x4]]  ;;  %v100_v29 = vmul.f32 %v544_v24, %v49_v6  ;;  %v101_v30 = vmul.f32 %v544_v24, %v50_v7 }
  0x3d   :  { %v79_v31 = vmul.f32 %v521_v15, %v69_v23  ;;  %v89_v32 = vmul.f32 %v531_v19, %v69_v23  ;;  %v557_v33 = vstv %s512_s3  ;;  %s366_s18 = sld [smem:[#allocation3 + $0x4]]  ;;  %v80_v34 = vmul.f32 %v521_v15, %v70_v25 }
  0x3e   :  { %v560_v35 = vstv %s361_s13  ;;  %s367_s19 = sld [smem:[#allocation4 + $0x4]]  ;;  %v90_v36 = vmul.f32 %v531_v19, %v70_v25  ;;  %v81_v37 = vmul.f32 %v521_v15, %v71_v26  ;;  %v91_v38 = vmul.f32 %v531_v19, %v71_v26 }
  0x3f   :  { %v107_v39 = vsub.f32 %v89_v32, %v99_v27  ;;  %v137_v40 = vmul.f32 %v560_v35, %v79_v31  ;;  %v567_v41 = vstv %s523_s14  ;;  %s368_s20 = sld [smem:[#allocation5 + $0x5]]  ;;  %v138_v42 = vmul.f32 %v560_v35, %v80_v34 }
  0x40   :  { %v570_v43 = vstv %s363_s15  ;;  %s369_s21 = sld [smem:[#allocation3 + $0x5]]  ;;  %v108_v44 = vsub.f32 %v90_v36, %v100_v29  ;;  %v109_v45 = vsub.f32 %v91_v38, %v101_v30  ;;  %v139_v46 = vmul.f32 %v560_v35, %v81_v37 }
  0x41   :  { %v117_v47 = vmul.f32 %v550_v28, %v107_v39  ;;  %v127_v48 = vmul.f32 %v557_v33, %v107_v39  ;;  %v575_v49 = vstv %s364_s16  ;;  %s370_s22 = sld [smem:[#allocation4 + $0x5]]  ;;  %v72_v50 = vsub.f32 %v61_v17, %v519_v14 }
  0x42   :  { %v578_v51 = vstv %s365_s17  ;;  %s371_s23 = sld [smem:[#allocation5 + $0x6]]  ;;  %v118_v52 = vmul.f32 %v550_v28, %v108_v44  ;;  %v128_v53 = vmul.f32 %v557_v33, %v108_v44  ;;  %v119_v54 = vmul.f32 %v550_v28, %v109_v45 }
  0x43   :  { %v145_v55 = vsub.f32 %v127_v48, %v137_v40  ;;  %v175_v56 = vmul.f32 %v575_v49, %v117_v47  ;;  %v584_v57 = vstv %s366_s18  ;;  %s372_s0 = sld [smem:[#allocation3 + $0x6]]  ;;  %v129_v58 = vmul.f32 %v557_v33, %v109_v45 }
  0x44   :  { %v587_v59 = vstv %s367_s19  ;;  %s373_s1 = sld [smem:[#allocation4 + $0x6]]  ;;  %v146_v60 = vsub.f32 %v128_v53, %v138_v42  ;;  %v176_v61 = vmul.f32 %v575_v49, %v118_v52  ;;  %v177_v62 = vmul.f32 %v575_v49, %v119_v54 }
  0x45   :  { %v155_v63 = vmul.f32 %v567_v41, %v145_v55  ;;  %v165_v0 = vmul.f32 %v570_v43, %v145_v55  ;;  %v593_v2 = vstv %s368_s20  ;;  %s374_s24 = sld [smem:[#allocation3 + $0x7]]  ;;  %v147_v3 = vsub.f32 %v129_v58, %v139_v46 }
  0x46   :  { %v595_v4 = vstv %s369_s21  ;;  %s375_s25 = sld [smem:[#allocation4 + $0x7]]  ;;  %v156_v6 = vmul.f32 %v567_v41, %v146_v60  ;;  %v166_v7 = vmul.f32 %v570_v43, %v146_v60  ;;  %v82_v8 = vmul.f32 %v521_v15, %v72_v50 }
  0x47   :  { %v183_v9 = vsub.f32 %v165_v0, %v175_v56  ;;  %v213_v10 = vmul.f32 %v587_v59, %v155_v63  ;;  %v601_v11 = vstv %s370_s22  ;;  %v157_v12 = vmul.f32 %v567_v41, %v147_v3 }
  0x48   :  { %v604_v13 = vstv %s371_s23  ;;  %v184_v17 = vsub.f32 %v166_v7, %v176_v61  ;;  %v214_v23 = vmul.f32 %v587_v59, %v156_v6  ;;  %v167_v25 = vmul.f32 %v570_v43, %v147_v3 }
  0x49   :  { %v193_v26 = vmul.f32 %v578_v51, %v183_v9  ;;  %v203_v27 = vmul.f32 %v584_v57, %v183_v9  ;;  %v610_v29 = vstv %s372_s0  ;;  %v215_v30 = vmul.f32 %v587_v59, %v157_v12 }
  0x4a   :  { %v613_v31 = vstv %s373_s1  ;;  %v194_v32 = vmul.f32 %v578_v51, %v184_v17  ;;  %v204_v34 = vmul.f32 %v584_v57, %v184_v17  ;;  %v185_v36 = vsub.f32 %v167_v25, %v177_v62 }
  0x4b   :  { %v221_v37 = vsub.f32 %v203_v27, %v213_v10  ;;  %v251_v38 = vmul.f32 %v601_v11, %v193_v26  ;;  %v618_v39 = vstv %s374_s24  ;;  %v92_v40 = vmul.f32 %v531_v19, %v72_v50 }
  0x4c   :  { %v621_v42 = vstv %s375_s25  ;;  %v222_v44 = vsub.f32 %v204_v34, %v214_v23  ;;  %v252_v45 = vmul.f32 %v601_v11, %v194_v32  ;;  %v195_v46 = vmul.f32 %v578_v51, %v185_v36 }
  0x4d   :  { %v231_v47 = vmul.f32 %v593_v2, %v221_v37  ;;  %v241_v48 = vmul.f32 %v595_v4, %v221_v37  ;;  %v205_v52 = vmul.f32 %v584_v57, %v185_v36  ;;  %v102_v53 = vmul.f32 %v544_v24, %v526_v16 }
  0x4e   :  { %v232_v54 = vmul.f32 %v593_v2, %v222_v44  ;;  %v242_v50 = vmul.f32 %v595_v4, %v222_v44  ;;  %v253_v55 = vmul.f32 %v601_v11, %v195_v46  ;;  %v140_v56 = vmul.f32 %v560_v35, %v82_v8 }
  0x4f   :  { %v259_v58 = vsub.f32 %v241_v48, %v251_v38  ;;  %v289_v60 = vmul.f32 %v613_v31, %v231_v47  ;;  %v223_v61 = vsub.f32 %v205_v52, %v215_v30  ;;  %v110_v62 = vsub.f32 %v92_v40, %v102_v53 }
  0x50   :  { %v260_v63 = vsub.f32 %v242_v50, %v252_v45  ;;  %v290_v0 = vmul.f32 %v613_v31, %v232_v54  ;;  %v73_v3 = vsub.f32 %v537_v21, %v519_v14  ;;  %v103_v16 = vmul.f32 %v544_v24, %v534_v20 }
  0x51   :  { %v269_v6 = vmul.f32 %v604_v13, %v259_v58  ;;  %v279_v7 = vmul.f32 %v610_v29, %v259_v58  ;;  %v233_v8 = vmul.f32 %v593_v2, %v223_v61  ;;  %v243_v9 = vmul.f32 %v595_v4, %v223_v61 }
  0x52   :  { %v270_v10 = vmul.f32 %v604_v13, %v260_v63  ;;  %v280_v12 = vmul.f32 %v610_v29, %v260_v63  ;;  %v120_v17 = vmul.f32 %v550_v28, %v110_v62  ;;  %v130_v23 = vmul.f32 %v557_v33, %v110_v62 }
  0x53   :  { %v297_v21 = vsub.f32 %v279_v7, %v289_v60  ;;  %v317_v25 = vmul.f32 %v621_v42, %v269_v6  ;;  %v261_v20 = vsub.f32 %v243_v9, %v253_v55  ;;  %v291_v26 = vmul.f32 %v613_v31, %v233_v8  ;;  %v44_v60 = vld [vmem:[#allocation6 + $0x30] sm:$0xff] }
  0x54   :  { %v298_v27 = vsub.f32 %v280_v12, %v290_v0  ;;  %v318_v30 = vmul.f32 %v621_v42, %v270_v10  ;;  %v148_v32 = vsub.f32 %v130_v23, %v140_v56  ;;  %v178_v34 = vmul.f32 %v575_v49, %v120_v17 }
  0x55   :  { %v307_v36 = vmul.f32 %v618_v39, %v297_v21  ;;  %v271_v37 = vmul.f32 %v604_v13, %v261_v20  ;;  %v281_v38 = vmul.f32 %v610_v29, %v261_v20  ;;  %v83_v40 = vmul.f32 %v521_v15, %v73_v3  ;;  %v45_v21 = vld [vmem:[#allocation6 + $0x38] sm:$0xff] }
  0x56   :  { %v308_v44 = vmul.f32 %v618_v39, %v298_v27  ;;  %v158_v45 = vmul.f32 %v567_v41, %v148_v32  ;;  %v168_v46 = vmul.f32 %v570_v43, %v148_v32  ;;  %v93_v47 = vmul.f32 %v531_v19, %v73_v3 }
  0x57   :  { %v325_v48 = vsub.f32 %v307_v36, %v317_v25  ;;  %v299_v52 = vsub.f32 %v281_v38, %v291_v26  ;;  %v319_v53 = vmul.f32 %v621_v42, %v271_v37  ;;  %v141_v54 = vmul.f32 %v560_v35, %v83_v40 }
  0x58   :  { %v326_v50 = vsub.f32 %v308_v44, %v318_v30  ;;  %v186_v55 = vsub.f32 %v168_v46, %v178_v34  ;;  %v216_v56 = vmul.f32 %v587_v59, %v158_v45  ;;  %v111_v58 = vsub.f32 %v93_v47, %v103_v16 }
  0x59   :  { %333 = vst [vmem:[#allocation9] sm:$0xff] %v325_v48  ;;  %v309_v61 = vmul.f32 %v618_v39, %v299_v52  ;;  %v63_v62 = vmul.f32 %v510_v5, %v529_v18  ;;  %v104_v63 = vmul.f32 %v544_v24, %v541_v22  ;;  %v54_v0 = vmul.f32 %v505_v1, %v44_v60 }
  0x5a   :  { %334 = vst [vmem:[#allocation9 + $0x8] sm:$0xff] %v326_v50  ;;  %v196_v3 = vmul.f32 %v578_v51, %v186_v55  ;;  %v206_v6 = vmul.f32 %v584_v57, %v186_v55  ;;  %v121_v7 = vmul.f32 %v550_v28, %v111_v58  ;;  %v131_v16 = vmul.f32 %v557_v33, %v111_v58 }
  0x5b   :  { %v327_v8 = vsub.f32 %v309_v61, %v319_v53  ;;  %v74_v9 = vsub.f32 %v63_v62, %v519_v14  ;;  %v64_v10 = vmul.f32 %v510_v5, %v44_v60  ;;  %v105_v18 = vmul.f32 %v544_v24, %v54_v0 }
  0x5c   :  { %v224_v12 = vsub.f32 %v206_v6, %v216_v56  ;;  %v254_v22 = vmul.f32 %v601_v11, %v196_v3  ;;  %v149_v17 = vsub.f32 %v131_v16, %v141_v54  ;;  %v179_v23 = vmul.f32 %v575_v49, %v121_v7 }
  0x5d   :  { %335 = vst [vmem:[#allocation9 + $0x10] sm:$0xff] %v327_v8  ;;  %v84_v25 = vmul.f32 %v521_v15, %v74_v9  ;;  %v94_v20 = vmul.f32 %v531_v19, %v74_v9  ;;  %v75_v26 = vsub.f32 %v64_v10, %v519_v14  ;;  %v55_v27 = vmul.f32 %v505_v1, %v45_v21 }
  0x5e   :  { %v234_v30 = vmul.f32 %v593_v2, %v224_v12  ;;  %v244_v32 = vmul.f32 %v595_v4, %v224_v12  ;;  %v159_v34 = vmul.f32 %v567_v41, %v149_v17  ;;  %v169_v36 = vmul.f32 %v570_v43, %v149_v17 }
  0x5f   :  { %v112_v37 = vsub.f32 %v94_v20, %v104_v63  ;;  %v142_v38 = vmul.f32 %v560_v35, %v84_v25  ;;  %v85_v40 = vmul.f32 %v521_v15, %v75_v26  ;;  %v95_v44 = vmul.f32 %v531_v19, %v75_v26 }
  0x60   :  { %v262_v45 = vsub.f32 %v244_v32, %v254_v22  ;;  %v292_v46 = vmul.f32 %v613_v31, %v234_v30  ;;  %v187_v47 = vsub.f32 %v169_v36, %v179_v23  ;;  %v217_v1 = vmul.f32 %v587_v59, %v159_v34 }
  0x61   :  { %v122_v48 = vmul.f32 %v550_v28, %v112_v37  ;;  %v132_v52 = vmul.f32 %v557_v33, %v112_v37  ;;  %v113_v53 = vsub.f32 %v95_v44, %v105_v18  ;;  %v143_v54 = vmul.f32 %v560_v35, %v85_v40 }
  0x62   :  { %v272_v50 = vmul.f32 %v604_v13, %v262_v45  ;;  %v282_v55 = vmul.f32 %v610_v29, %v262_v45  ;;  %v197_v56 = vmul.f32 %v578_v51, %v187_v47  ;;  %v207_v58 = vmul.f32 %v584_v57, %v187_v47 }
  0x63   :  { %v150_v60 = vsub.f32 %v132_v52, %v142_v38  ;;  %v180_v61 = vmul.f32 %v575_v49, %v122_v48  ;;  %v123_v62 = vmul.f32 %v550_v28, %v113_v53  ;;  %v133_v63 = vmul.f32 %v557_v33, %v113_v53 }
  0x64   :  { %v300_v0 = vsub.f32 %v282_v55, %v292_v46  ;;  %v320_v3 = vmul.f32 %v621_v42, %v272_v50  ;;  %v225_v6 = vsub.f32 %v207_v58, %v217_v1  ;;  %v255_v7 = vmul.f32 %v601_v11, %v197_v56 }
  0x65   :  { %v160_v16 = vmul.f32 %v567_v41, %v150_v60  ;;  %v170_v8 = vmul.f32 %v570_v43, %v150_v60  ;;  %v151_v9 = vsub.f32 %v133_v63, %v143_v54  ;;  %v181_v10 = vmul.f32 %v575_v49, %v123_v62 }
  0x66   :  { %v310_v18 = vmul.f32 %v618_v39, %v300_v0  ;;  %v235_v12 = vmul.f32 %v593_v2, %v225_v6  ;;  %v245_v22 = vmul.f32 %v595_v4, %v225_v6  ;;  %v65_v17 = vmul.f32 %v510_v5, %v45_v21 }
  0x67   :  { %v188_v23 = vsub.f32 %v170_v8, %v180_v61  ;;  %v218_v25 = vmul.f32 %v587_v59, %v160_v16  ;;  %v161_v20 = vmul.f32 %v567_v41, %v151_v9  ;;  %v171_v26 = vmul.f32 %v570_v43, %v151_v9 }
  0x68   :  { %v328_v30 = vsub.f32 %v310_v18, %v320_v3  ;;  %v263_v32 = vsub.f32 %v245_v22, %v255_v7  ;;  %v293_v34 = vmul.f32 %v613_v31, %v235_v12  ;;  %v76_v36 = vsub.f32 %v65_v17, %v519_v14 }
  0x69   :  { %v198_v37 = vmul.f32 %v578_v51, %v188_v23  ;;  %v208_v38 = vmul.f32 %v584_v57, %v188_v23  ;;  %v189_v40 = vsub.f32 %v171_v26, %v181_v10  ;;  %v219_v5 = vmul.f32 %v587_v59, %v161_v20 }
  0x6a   :  { %336 = vst [vmem:[#allocation9 + $0x18] sm:$0xff] %v328_v30  ;;  %v273_v21 = vmul.f32 %v604_v13, %v263_v32  ;;  %v283_v44 = vmul.f32 %v610_v29, %v263_v32  ;;  %v86_v45 = vmul.f32 %v521_v15, %v76_v36  ;;  %v96_v46 = vmul.f32 %v531_v19, %v76_v36 }
  0x6b   :  { %v226_v47 = vsub.f32 %v208_v38, %v218_v25  ;;  %v256_v1 = vmul.f32 %v601_v11, %v198_v37  ;;  %v199_v14 = vmul.f32 %v578_v51, %v189_v40  ;;  %v209_v48 = vmul.f32 %v584_v57, %v189_v40 }
  0x6c   :  { %v301_v52 = vsub.f32 %v283_v44, %v293_v34  ;;  %v321_v53 = vmul.f32 %v621_v42, %v273_v21  ;;  %v106_v54 = vmul.f32 %v544_v24, %v55_v27  ;;  %v144_v60 = vmul.f32 %v560_v35, %v86_v45 }
  0x6d   :  { %v236_v50 = vmul.f32 %v593_v2, %v226_v47  ;;  %v246_v55 = vmul.f32 %v595_v4, %v226_v47  ;;  %v227_v56 = vsub.f32 %v209_v48, %v219_v5  ;;  %v257_v15 = vmul.f32 %v601_v11, %v199_v14 }
  0x6e   :  { %v311_v19 = vmul.f32 %v618_v39, %v301_v52  ;;  %v114_v58 = vsub.f32 %v96_v46, %v106_v54 }
  0x6f   :  { %v264_v61 = vsub.f32 %v246_v55, %v256_v1  ;;  %v294_v62 = vmul.f32 %v613_v31, %v236_v50  ;;  %v237_v63 = vmul.f32 %v593_v2, %v227_v56  ;;  %v247_v0 = vmul.f32 %v595_v4, %v227_v56 }
  0x70   :  { %v329_v24 = vsub.f32 %v311_v19, %v321_v53  ;;  %v124_v27 = vmul.f32 %v550_v28, %v114_v58  ;;  %v134_v3 = vmul.f32 %v557_v33, %v114_v58 }
  0x71   :  { %v274_v6 = vmul.f32 %v604_v13, %v264_v61  ;;  %v284_v7 = vmul.f32 %v610_v29, %v264_v61  ;;  %v265_v16 = vsub.f32 %v247_v0, %v257_v15  ;;  %v295_v8 = vmul.f32 %v613_v31, %v237_v63 }
  0x72   :  { %337 = vst [vmem:[#allocation9 + $0x20] sm:$0xff] %v329_v24  ;;  %v152_v35 = vsub.f32 %v134_v3, %v144_v60  ;;  %v182_v9 = vmul.f32 %v575_v49, %v124_v27 }
  0x73   :  { %v302_v10 = vsub.f32 %v284_v7, %v294_v62  ;;  %v322_v18 = vmul.f32 %v621_v42, %v274_v6  ;;  %v275_v12 = vmul.f32 %v604_v13, %v265_v16  ;;  %v285_v28 = vmul.f32 %v610_v29, %v265_v16 }
  0x74   :  { %v162_v33 = vmul.f32 %v567_v41, %v152_v35  ;;  %v172_v22 = vmul.f32 %v570_v43, %v152_v35 }
  0x75   :  { %v312_v17 = vmul.f32 %v618_v39, %v302_v10  ;;  %v303_v23 = vsub.f32 %v285_v28, %v295_v8  ;;  %v323_v25 = vmul.f32 %v621_v42, %v275_v12 }
  0x76   :  { %v190_v20 = vsub.f32 %v172_v22, %v182_v9  ;;  %v220_v26 = vmul.f32 %v587_v59, %v162_v33 }
  0x77   :  { %v330_v49 = vsub.f32 %v312_v17, %v322_v18  ;;  %v313_v30 = vmul.f32 %v618_v39, %v303_v23 }
  0x78   :  { %v200_v32 = vmul.f32 %v578_v51, %v190_v20  ;;  %v210_v34 = vmul.f32 %v584_v57, %v190_v20 }
  0x79   :  { %338 = vst [vmem:[#allocation9 + $0x28] sm:$0xff] %v330_v49  ;;  %v331_v36 = vsub.f32 %v313_v30, %v323_v25 }
  0x7a   :  { %v228_v41 = vsub.f32 %v210_v34, %v220_v26  ;;  %v258_v43 = vmul.f32 %v601_v11, %v200_v32 }
  0x7b   :  { %339 = vst [vmem:[#allocation9 + $0x30] sm:$0xff] %v331_v36 }
  0x7c   :  { %v238_v37 = vmul.f32 %v593_v2, %v228_v41  ;;  %v248_v38 = vmul.f32 %v595_v4, %v228_v41 }
  0x7e   :  { %v266_v40 = vsub.f32 %v248_v38, %v258_v43  ;;  %v296_v59 = vmul.f32 %v613_v31, %v238_v37 }
  0x80   :  { %v276_v5 = vmul.f32 %v604_v13, %v266_v40  ;;  %v286_v21 = vmul.f32 %v610_v29, %v266_v40 }
  0x82   :  { %v304_v51 = vsub.f32 %v286_v21, %v296_v59  ;;  %v324_v57 = vmul.f32 %v621_v42, %v276_v5 }
  0x84   :  { %v314_v44 = vmul.f32 %v618_v39, %v304_v51 }
  0x86   :  { %v332_v11 = vsub.f32 %v314_v44, %v324_v57 }
  0x88   :  { %340 = vst [vmem:[#allocation9 + $0x38] sm:$0xff] %v332_v11 }
  0x89   :  { %448 = shalt.err (!%p445_p10)
}
  0x8a   :  { %350 = dma.vmem_to_hbm [thread:$0]  %s348_s27, 1024, %s765_s4, [#allocation8]  }
  0x8b   :  { %461 = dma.done.wait [#allocation8], 1024  }
  0x8c   :  { %462 = vsyncadd [#allocation8], 4294966272 }
  0x8d   :  { %354 = vsyncpa [#allocation7], 1 }
  0x8e   :  { %355 = vsyncpa [#allocation8], 1 }

</bundles_post_ra>
